<compile_context>
chip_gen: v7x
topology: tpu7x:2x2x1
jax: 0.10.0
libtpu: 0.0.40
codegen_flags: <defaults>
</compile_context>

<pallas_src>
import functools

import jax
import jax.numpy as jnp
import numpy as np
from jax import lax
from jax.experimental import pallas as pl
from jax.experimental.pallas import tpu as pltpu


def relu_conv_kernel(x_ref, w_ref, o_ref, *, wp, cin, taps, m_rows):
    """Fused ReLU + 3x3 conv as 9 shifted-window matmuls.

    x_ref: (x_rows, cin) f32 — zero-padded NHWC image flattened over (h_pad, w_pad).
    w_ref: (len(taps)*cin, cout) bf16 — weight rows ordered (kh, kw, cin).
    o_ref: (m_rows, cout) f32 — row i corresponds to flattened output index oh*wp + ow.
    """
    acc = jnp.zeros(o_ref.shape, jnp.float32)
    for k, (dh, dw) in enumerate(taps):           # statically unrolled (9 taps)
        off = dh * wp + dw                        # row offset of this shifted window
        # ReLU in f32 (no bf16 VALU on v5e), then cast for a single-pass bf16 MXU matmul.
        win = jnp.maximum(x_ref[pl.ds(off, m_rows), :], 0.0).astype(jnp.bfloat16)
        acc = acc + jnp.dot(
            win, w_ref[pl.ds(k * cin, cin), :], preferred_element_type=jnp.float32
        )
    o_ref[...] = acc


@jax.jit
def relu_conv2d_pallas(x_nchw, w_oihw):
    """x_nchw: (1, 128, 7, 7) f32; w_oihw: (32, 128, 3, 3) f32. Returns (1, 32, 7, 7)."""
    n, cin, h, w = x_nchw.shape
    cout, cin2, kh, kw = w_oihw.shape
    assert n == 1 and cin2 == cin and (kh, kw) == (3, 3)

    hp, wp = h + 2, w + 2                              # zero-padded spatial dims (pad=1)
    m_rows = (((h - 1) * wp + w) + 7) // 8 * 8         # 61 -> 64 accumulator rows
    max_off = (kh - 1) * wp + (kw - 1)                 # 20: largest tap offset
    extra_h = max(0, -(-(max_off + m_rows - hp * wp) // wp))   # extra zero rows so
    x_rows = (hp + extra_h) * wp                       # in-kernel windows stay in bounds

    # ---- cheap wrapper glue: NHWC transpose + one pad + (free) reshapes ----
    x_nhwc = jnp.transpose(x_nchw, (0, 2, 3, 1))                          # (1,H,W,C)
    x_pad = jnp.pad(x_nhwc, ((0, 0), (1, 1 + extra_h), (1, 1), (0, 0)))   # (1,H+2+e,W+2,C)
    x_flat = x_pad.reshape(x_rows, cin)                                   # (90, 128) f32

    # weight: (Cout,Cin,KH,KW) -> (KH,KW,Cin,Cout) -> (KH*KW*Cin, Cout), bf16
    w_mat = jnp.transpose(w_oihw, (2, 3, 1, 0)).reshape(kh * kw * cin, cout)
    w_mat = w_mat.astype(jnp.bfloat16)

    taps = tuple((dh, dw) for dh in range(kh) for dw in range(kw))
    kernel = functools.partial(
        relu_conv_kernel, wp=wp, cin=cin, taps=taps, m_rows=m_rows
    )

    out_mat = pl.pallas_call(
        kernel,
        out_shape=jax.ShapeDtypeStruct((m_rows, cout), jnp.float32),
        grid=(1,),
        in_specs=[
            pl.BlockSpec((x_rows, cin), lambda i: (0, 0),
                         memory_space=pltpu.MemorySpace.VMEM),
            pl.BlockSpec((kh * kw * cin, cout), lambda i: (0, 0),
                         memory_space=pltpu.MemorySpace.VMEM),
        ],
        out_specs=pl.BlockSpec((m_rows, cout), lambda i: (0, 0),
                               memory_space=pltpu.MemorySpace.VMEM),
        compiler_params=pltpu.CompilerParams(dimension_semantics=("arbitrary",)),
        cost_estimate=pl.CostEstimate(
            flops=2 * m_rows * kh * kw * cin * cout,
            transcendentals=0,
            bytes_accessed=x_rows * cin * 4 + kh * kw * cin * cout * 2 + m_rows * cout * 4,
        ),
    )(x_flat, w_mat)

    # valid output rows are i = oh*wp + ow with ow < w; back to NCHW
    out_hwc = out_mat[: h * wp].reshape(h, wp, cout)[:, :w, :]            # (H, W, Cout)
    return jnp.transpose(out_hwc, (2, 0, 1))[None].astype(x_nchw.dtype)   # (1, Cout, H, W)


if __name__ == "__main__":
    key = jax.random.PRNGKey(0)
    kx, kw_key = jax.random.split(key)

    # Shapes implied by the module: x395 ~ (1, 128, 7, 7), conv weight (32, 128, 3, 3).
    x = jax.random.normal(kx, (1, 128, 7, 7), dtype=jnp.float32)
    fan_in = 128 * 3 * 3
    w = jax.random.normal(kw_key, (32, 128, 3, 3), dtype=jnp.float32) * (2.0 / fan_in) ** 0.5

    out = relu_conv2d_pallas(x, w)
    out = jax.block_until_ready(out)

    # Reference: ReLU then conv (NCHW/OIHW) in f32.
    ref = lax.conv_general_dilated(
        jnp.maximum(x, 0.0), w,
        window_strides=(1, 1), padding=((1, 1), (1, 1)),
        dimension_numbers=("NCHW", "OIHW", "NCHW"),
    )
    assert out.shape == (1, 32, 7, 7)
    # bf16 MXU operands (f32 accumulation) -> relaxed tolerance vs the f32 XLA reference.
    np.testing.assert_allclose(np.asarray(out), np.asarray(ref), rtol=3e-2, atol=3e-2)

    print("KERNEL_OK")
</pallas_src>

<mosaic_0001>
module attributes {stable_mosaic.version = 11 : i64} {
  func.func @relu_conv_kernel(%arg0: i32, %arg1: memref<90x128xf32, #tpu.memory_space<vmem>>, %arg2: memref<1152x32xbf16, #tpu.memory_space<vmem>>, %arg3: memref<64x32xf32, #tpu.memory_space<vmem>>) attributes {dimension_semantics = [#tpu.dimension_semantics<arbitrary>], iteration_bounds = array<i64: 1>, scalar_prefetch = 0 : i64, scratch_operands = 0 : i64, tpu.core_type = #tpu.core_type<tc>, window_params = [{pipeline_mode = #tpu.pipeline_mode<synchronous>, transform_indices = @transform_0, window_bounds = array<i64: 90, 128>}, {pipeline_mode = #tpu.pipeline_mode<synchronous>, transform_indices = @transform_1, window_bounds = array<i64: 1152, 32>}, {pipeline_mode = #tpu.pipeline_mode<synchronous>, transform_indices = @transform_2, window_bounds = array<i64: 64, 32>}]} {
    %cst = arith.constant 0.000000e+00 : f32
    %0 = vector.broadcast %cst : f32 to vector<64x32xf32>
    %c0 = arith.constant 0 : index
    %c0_0 = arith.constant 0 : index
    %1 = vector.load %arg1[%c0, %c0_0] : memref<90x128xf32, #tpu.memory_space<vmem>>, vector<64x128xf32>
    %cst_1 = arith.constant 0.000000e+00 : f32
    %2 = vector.broadcast %cst_1 : f32 to vector<64x128xf32>
    %3 = arith.maximumf %1, %2 : vector<64x128xf32>
    %4 = arith.truncf %3 : vector<64x128xf32> to vector<64x128xbf16>
    %c0_2 = arith.constant 0 : index
    %c0_3 = arith.constant 0 : index
    %5 = vector.load %arg2[%c0_2, %c0_3] : memref<1152x32xbf16, #tpu.memory_space<vmem>>, vector<128x32xbf16>
    %cst_4 = arith.constant dense<0.000000e+00> : vector<64x32xf32>
    %6 = tpu.matmul %4, %5, %cst_4 {dimension_numbers = #tpu.dot_dimension_numbers<[1], [0], [0], [1], [0, 0, 1, 1], [], []>} : vector<64x128xbf16>, vector<128x32xbf16>, vector<64x32xf32> -> vector<64x32xf32>
    %7 = arith.addf %0, %6 : vector<64x32xf32>
    %c1 = arith.constant 1 : index
    %c0_5 = arith.constant 0 : index
    %8 = vector.load %arg1[%c1, %c0_5] : memref<90x128xf32, #tpu.memory_space<vmem>>, vector<64x128xf32>
    %cst_6 = arith.constant 0.000000e+00 : f32
    %9 = vector.broadcast %cst_6 : f32 to vector<64x128xf32>
    %10 = arith.maximumf %8, %9 : vector<64x128xf32>
    %11 = arith.truncf %10 : vector<64x128xf32> to vector<64x128xbf16>
    %c128 = arith.constant 128 : index
    %c0_7 = arith.constant 0 : index
    %12 = vector.load %arg2[%c128, %c0_7] : memref<1152x32xbf16, #tpu.memory_space<vmem>>, vector<128x32xbf16>
    %cst_8 = arith.constant dense<0.000000e+00> : vector<64x32xf32>
    %13 = tpu.matmul %11, %12, %cst_8 {dimension_numbers = #tpu.dot_dimension_numbers<[1], [0], [0], [1], [0, 0, 1, 1], [], []>} : vector<64x128xbf16>, vector<128x32xbf16>, vector<64x32xf32> -> vector<64x32xf32>
    %14 = arith.addf %7, %13 : vector<64x32xf32>
    %c2 = arith.constant 2 : index
    %c0_9 = arith.constant 0 : index
    %15 = vector.load %arg1[%c2, %c0_9] : memref<90x128xf32, #tpu.memory_space<vmem>>, vector<64x128xf32>
    %cst_10 = arith.constant 0.000000e+00 : f32
    %16 = vector.broadcast %cst_10 : f32 to vector<64x128xf32>
    %17 = arith.maximumf %15, %16 : vector<64x128xf32>
    %18 = arith.truncf %17 : vector<64x128xf32> to vector<64x128xbf16>
    %c256 = arith.constant 256 : index
    %c0_11 = arith.constant 0 : index
    %19 = vector.load %arg2[%c256, %c0_11] : memref<1152x32xbf16, #tpu.memory_space<vmem>>, vector<128x32xbf16>
    %cst_12 = arith.constant dense<0.000000e+00> : vector<64x32xf32>
    %20 = tpu.matmul %18, %19, %cst_12 {dimension_numbers = #tpu.dot_dimension_numbers<[1], [0], [0], [1], [0, 0, 1, 1], [], []>} : vector<64x128xbf16>, vector<128x32xbf16>, vector<64x32xf32> -> vector<64x32xf32>
    %21 = arith.addf %14, %20 : vector<64x32xf32>
    %c9 = arith.constant 9 : index
    %c0_13 = arith.constant 0 : index
    %22 = vector.load %arg1[%c9, %c0_13] : memref<90x128xf32, #tpu.memory_space<vmem>>, vector<64x128xf32>
    %cst_14 = arith.constant 0.000000e+00 : f32
    %23 = vector.broadcast %cst_14 : f32 to vector<64x128xf32>
    %24 = arith.maximumf %22, %23 : vector<64x128xf32>
    %25 = arith.truncf %24 : vector<64x128xf32> to vector<64x128xbf16>
    %c384 = arith.constant 384 : index
    %c0_15 = arith.constant 0 : index
    %26 = vector.load %arg2[%c384, %c0_15] : memref<1152x32xbf16, #tpu.memory_space<vmem>>, vector<128x32xbf16>
    %cst_16 = arith.constant dense<0.000000e+00> : vector<64x32xf32>
    %27 = tpu.matmul %25, %26, %cst_16 {dimension_numbers = #tpu.dot_dimension_numbers<[1], [0], [0], [1], [0, 0, 1, 1], [], []>} : vector<64x128xbf16>, vector<128x32xbf16>, vector<64x32xf32> -> vector<64x32xf32>
    %28 = arith.addf %21, %27 : vector<64x32xf32>
    %c10 = arith.constant 10 : index
    %c0_17 = arith.constant 0 : index
    %29 = vector.load %arg1[%c10, %c0_17] : memref<90x128xf32, #tpu.memory_space<vmem>>, vector<64x128xf32>
    %cst_18 = arith.constant 0.000000e+00 : f32
    %30 = vector.broadcast %cst_18 : f32 to vector<64x128xf32>
    %31 = arith.maximumf %29, %30 : vector<64x128xf32>
    %32 = arith.truncf %31 : vector<64x128xf32> to vector<64x128xbf16>
    %c512 = arith.constant 512 : index
    %c0_19 = arith.constant 0 : index
    %33 = vector.load %arg2[%c512, %c0_19] : memref<1152x32xbf16, #tpu.memory_space<vmem>>, vector<128x32xbf16>
    %cst_20 = arith.constant dense<0.000000e+00> : vector<64x32xf32>
    %34 = tpu.matmul %32, %33, %cst_20 {dimension_numbers = #tpu.dot_dimension_numbers<[1], [0], [0], [1], [0, 0, 1, 1], [], []>} : vector<64x128xbf16>, vector<128x32xbf16>, vector<64x32xf32> -> vector<64x32xf32>
    %35 = arith.addf %28, %34 : vector<64x32xf32>
    %c11 = arith.constant 11 : index
    %c0_21 = arith.constant 0 : index
    %36 = vector.load %arg1[%c11, %c0_21] : memref<90x128xf32, #tpu.memory_space<vmem>>, vector<64x128xf32>
    %cst_22 = arith.constant 0.000000e+00 : f32
    %37 = vector.broadcast %cst_22 : f32 to vector<64x128xf32>
    %38 = arith.maximumf %36, %37 : vector<64x128xf32>
    %39 = arith.truncf %38 : vector<64x128xf32> to vector<64x128xbf16>
    %c640 = arith.constant 640 : index
    %c0_23 = arith.constant 0 : index
    %40 = vector.load %arg2[%c640, %c0_23] : memref<1152x32xbf16, #tpu.memory_space<vmem>>, vector<128x32xbf16>
    %cst_24 = arith.constant dense<0.000000e+00> : vector<64x32xf32>
    %41 = tpu.matmul %39, %40, %cst_24 {dimension_numbers = #tpu.dot_dimension_numbers<[1], [0], [0], [1], [0, 0, 1, 1], [], []>} : vector<64x128xbf16>, vector<128x32xbf16>, vector<64x32xf32> -> vector<64x32xf32>
    %42 = arith.addf %35, %41 : vector<64x32xf32>
    %c18 = arith.constant 18 : index
    %c0_25 = arith.constant 0 : index
    %43 = vector.load %arg1[%c18, %c0_25] : memref<90x128xf32, #tpu.memory_space<vmem>>, vector<64x128xf32>
    %cst_26 = arith.constant 0.000000e+00 : f32
    %44 = vector.broadcast %cst_26 : f32 to vector<64x128xf32>
    %45 = arith.maximumf %43, %44 : vector<64x128xf32>
    %46 = arith.truncf %45 : vector<64x128xf32> to vector<64x128xbf16>
    %c768 = arith.constant 768 : index
    %c0_27 = arith.constant 0 : index
    %47 = vector.load %arg2[%c768, %c0_27] : memref<1152x32xbf16, #tpu.memory_space<vmem>>, vector<128x32xbf16>
    %cst_28 = arith.constant dense<0.000000e+00> : vector<64x32xf32>
    %48 = tpu.matmul %46, %47, %cst_28 {dimension_numbers = #tpu.dot_dimension_numbers<[1], [0], [0], [1], [0, 0, 1, 1], [], []>} : vector<64x128xbf16>, vector<128x32xbf16>, vector<64x32xf32> -> vector<64x32xf32>
    %49 = arith.addf %42, %48 : vector<64x32xf32>
    %c19 = arith.constant 19 : index
    %c0_29 = arith.constant 0 : index
    %50 = vector.load %arg1[%c19, %c0_29] : memref<90x128xf32, #tpu.memory_space<vmem>>, vector<64x128xf32>
    %cst_30 = arith.constant 0.000000e+00 : f32
    %51 = vector.broadcast %cst_30 : f32 to vector<64x128xf32>
    %52 = arith.maximumf %50, %51 : vector<64x128xf32>
    %53 = arith.truncf %52 : vector<64x128xf32> to vector<64x128xbf16>
    %c896 = arith.constant 896 : index
    %c0_31 = arith.constant 0 : index
    %54 = vector.load %arg2[%c896, %c0_31] : memref<1152x32xbf16, #tpu.memory_space<vmem>>, vector<128x32xbf16>
    %cst_32 = arith.constant dense<0.000000e+00> : vector<64x32xf32>
    %55 = tpu.matmul %53, %54, %cst_32 {dimension_numbers = #tpu.dot_dimension_numbers<[1], [0], [0], [1], [0, 0, 1, 1], [], []>} : vector<64x128xbf16>, vector<128x32xbf16>, vector<64x32xf32> -> vector<64x32xf32>
    %56 = arith.addf %49, %55 : vector<64x32xf32>
    %c20 = arith.constant 20 : index
    %c0_33 = arith.constant 0 : index
    %57 = vector.load %arg1[%c20, %c0_33] : memref<90x128xf32, #tpu.memory_space<vmem>>, vector<64x128xf32>
    %cst_34 = arith.constant 0.000000e+00 : f32
    %58 = vector.broadcast %cst_34 : f32 to vector<64x128xf32>
    %59 = arith.maximumf %57, %58 : vector<64x128xf32>
    %60 = arith.truncf %59 : vector<64x128xf32> to vector<64x128xbf16>
    %c1024 = arith.constant 1024 : index
    %c0_35 = arith.constant 0 : index
    %61 = vector.load %arg2[%c1024, %c0_35] : memref<1152x32xbf16, #tpu.memory_space<vmem>>, vector<128x32xbf16>
    %cst_36 = arith.constant dense<0.000000e+00> : vector<64x32xf32>
    %62 = tpu.matmul %60, %61, %cst_36 {dimension_numbers = #tpu.dot_dimension_numbers<[1], [0], [0], [1], [0, 0, 1, 1], [], []>} : vector<64x128xbf16>, vector<128x32xbf16>, vector<64x32xf32> -> vector<64x32xf32>
    %63 = arith.addf %56, %62 : vector<64x32xf32>
    %c0_37 = arith.constant 0 : index
    %c0_38 = arith.constant 0 : index
    %64 = vector.load %arg3[%c0_37, %c0_38] : memref<64x32xf32, #tpu.memory_space<vmem>>, vector<64x32xf32>
    tpu.vector_store %arg3[%c0_37, %c0_38], %63 {strides = array<i32>} : memref<64x32xf32, #tpu.memory_space<vmem>>, vector<64x32xf32>,
    return
  }
  func.func @transform_0(%arg0: i32) -> (i32, i32) {
    %c0_i32 = arith.constant 0 : i32
    %c0_i32_0 = arith.constant 0 : i32
    %c0_i32_1 = arith.constant 0 : i32
    return %c0_i32, %c0_i32_0 : i32, i32
  }
  func.func @transform_1(%arg0: i32) -> (i32, i32) {
    %c0_i32 = arith.constant 0 : i32
    %c0_i32_0 = arith.constant 0 : i32
    %c0_i32_1 = arith.constant 0 : i32
    return %c0_i32, %c0_i32_0 : i32, i32
  }
  func.func @transform_2(%arg0: i32) -> (i32, i32) {
    %c0_i32 = arith.constant 0 : i32
    %c0_i32_0 = arith.constant 0 : i32
    %c0_i32_1 = arith.constant 0 : i32
    return %c0_i32, %c0_i32_0 : i32, i32
  }
}

</mosaic_0001>

<bundles_post_ra>
// kernel: relu_conv2d_pallas.1
= control target key start
LH: loop header
LB: loop body
LE: loop exit
PB: predicated region body
PF: predicated region fallthrough
CT: control target
= control target key end

     0   :  { %vm1409_vm0 = vcmask 261120   ;;  %s2456_s1 = inlined_call_operand.vmem [shape: bf16[1152,32], index: 1, kind: input, shape index: {}]   ;;  %s2457_s0 = inlined_call_operand.vmem [shape: f32[90,128], index: 0, kind: input, shape index: {}]   ;;  %s2458_s2 = inlined_call_operand.vmem [shape: f32[64,32], index: 2, kind: output, shape index: {}]  }
   0x1   :  { %v1898_v0 = vld [vmem:[%s2456_s1 + $0x40] sm:$0xff]   ;;  %v1900_v2 = vld [vmem:[%s2456_s1 + $0x48] sm:$0xff]   ;;  %v1902_v4 = vld [vmem:[%s2456_s1 + $0x50] sm:$0xff]  }
   0x2   :  { %v1899_v1 = vld [vmem:[%s2456_s1 + $0x100] sm:$0xff]   ;;  %1602 = vmatprep.subr.bf16.mxu1 %v1898_v0  ;;  %v1901_v3 = vld [vmem:[%s2456_s1 + $0x108] sm:$0xff]   ;;  %v1903_v5 = vld [vmem:[%s2456_s1 + $0x110] sm:$0xff]  }
   0x3   :  { %1698 = vmatprep.subr.bf16.mxu0 %v1899_v1  ;;  %1603 = vmatpush3.bf16.msra.mxu1 %v1898_v0  ;;  %v1904_v6 = vld [vmem:[%s2456_s1 + $0x58] sm:$0xff]   ;;  %v1906_v8 = vld [vmem:[%s2456_s1 + $0x60] sm:$0xff]   ;;  %v1908_v10 = vld [vmem:[%s2456_s1 + $0x68] sm:$0xff]  }
   0x4   :  { %1699 = vmatpush3.bf16.msra.mxu0 %v1899_v1  ;;  %1604 = vmatprep.subr.bf16.mxu1 %v1900_v2  ;;  %v1905_v7 = vld [vmem:[%s2456_s1 + $0x118] sm:$0xff]   ;;  %v1907_v9 = vld [vmem:[%s2456_s1 + $0x120] sm:$0xff]   ;;  %v49_v12 = vld [vmem:[%s2457_s0 + $0x9] sm:$0xff] }
   0x5   :  { %1700 = vmatprep.subr.bf16.mxu0 %v1901_v3  ;;  %v48_v11 = vld [vmem:[%s2457_s0 + $0x1] sm:$0xff]  ;;  %v57_v15 = vmax.f32 %v49_v12, 0.0  ;;  %v2030_v16 = vld [vmem:[%s2457_s0 + $0xa] sm:$0xff]  ;;  %v625_v17 = vld [vmem:[%s2457_s0 + $0x12] sm:$0xff] }
   0x6   :  { %v1909_v13 = vld [vmem:[%s2456_s1 + $0x128] sm:$0xff]   ;;  %v56_v14 = vmax.f32 %v48_v11, 0.0  ;;  %v632_v18 = vmax.f32 %v2030_v16, 0.0  ;;  %v633_v20 = vmax.f32 %v625_v17, 0.0  ;;  %v50_v21 = vld [vmem:[%s2457_s0 + $0x11] sm:$0xff]  ;;  %v626_v24 = vld [vmem:[%s2457_s0 + $0x1a] sm:$0xff] }
   0x7   :  { %1605 = vmatpush3.bf16.msra.mxu1 %v1900_v2  ;;  %v1910_v22 = vld [vmem:[%s2456_s1 + $0x70] sm:$0xff]   ;;  %v58_v23 = vmax.f32 %v50_v21, 0.0  ;;  %v634_v27 = vmax.f32 %v626_v24, 0.0  ;;  %v1912_v28 = vld [vmem:[%s2456_s1 + $0x78] sm:$0xff]   ;;  %v627_v32 = vld [vmem:[%s2457_s0 + $0x22] sm:$0xff] }
   0x8   :  { %1701 = vmatpush3.bf16.msra.mxu0 %v1901_v3  ;;  %1606 = vmatprep.subr.bf16.mxu1 %v1902_v4  ;;  %v64_v19 = vpack.c.bf16 %v57_v15, %v56_v14  ;;  %v1911_v25 = vld [vmem:[%s2456_s1 + $0x130] sm:$0xff]   ;;  %v640_v26 = vpack.c.bf16 %v633_v20, %v632_v18  ;;  %v51_v30 = vld [vmem:[%s2457_s0 + $0x19] sm:$0xff]  ;;  %v635_v35 = vmax.f32 %v627_v32, 0.0  ;;  %v1916_v39 = vld [vmem:[%s2456_s1 + $0x8] sm:$0xff]  }
   0x9   :  { %1702 = vmatprep.subr.bf16.mxu0 %v1903_v5  ;;  %v2053_v29 = vpack.c.bf16 %v58_v23, %v57_v15  ;;  %v2058_v31 = vpack.c.bf16 %v634_v27, %v633_v20  ;;  %v1913_v33 = vld [vmem:[%s2456_s1 + $0x138] sm:$0xff]   ;;  %v59_v34 = vmax.f32 %v51_v30, 0.0  ;;  %v1914_v36 = vld [vmem:[%s2456_s1] sm:$0xff]   ;;  %v53_v42 = vld [vmem:[%s2457_s0 + $0x29] sm:$0xff] }
   0xa   :  { %1618 = vmatprep.mubr.bf16.mxu1 %v64_v19  ;;  %1714 = vmatprep.mubr.bf16.mxu0 %v640_v26  ;;  %v1915_v37 = vld [vmem:[%s2456_s1 + $0x140] sm:$0xff]   ;;  %v641_v41 = vpack.c.bf16 %v635_v35, %v634_v27  ;;  %v1917_v44 = vld [vmem:[%s2456_s1 + $0x148] sm:$0xff]   ;;  %v61_v45 = vmax.f32 %v53_v42, 0.0  ;;  %v629_v47 = vld [vmem:[%s2457_s0 + $0x32] sm:$0xff] }
   0xb   :  { %1607 = vmatpush3.bf16.msra.mxu1 %v1902_v4  ;;  %v65_v38 = vpack.c.bf16 %v59_v34, %v58_v23  ;;  %v52_v40 = vld [vmem:[%s2457_s0 + $0x21] sm:$0xff]  ;;  %v628_v46 = vld [vmem:[%s2457_s0 + $0x2a] sm:$0xff]  ;;  %v637_v49 = vmax.f32 %v629_v47, 0.0  ;;  %v2098_v53 = vld [vmem:[%s2457_s0 + $0x39] sm:$0xff] }
   0xc   :  { %1703 = vmatpush3.bf16.msra.mxu0 %v1903_v5  ;;  %1608 = vmatprep.subr.bf16.mxu1 %v1904_v6  ;;  %v60_v43 = vmax.f32 %v52_v40, 0.0  ;;  %v636_v48 = vmax.f32 %v628_v46, 0.0  ;;  %v54_v52 = vld [vmem:[%s2457_s0 + $0x31] sm:$0xff]  ;;  %v63_v56 = vmax.f32 %v2098_v53, 0.0  ;;  %v630_v57 = vld [vmem:[%s2457_s0 + $0x3a] sm:$0xff]  ;;  %v2107_v58 = vld [vmem:[%s2457_s0 + $0x42] sm:$0xff] }
   0xd   :  { %1704 = vmatprep.subr.bf16.mxu0 %v1905_v7  ;;  %v62_v55 = vmax.f32 %v54_v52, 0.0  ;;  %v1918_v59 = vld [vmem:[%s2456_s1 + $0x10] sm:$0xff]   ;;  %v638_v61 = vmax.f32 %v630_v57, 0.0  ;;  %v639_v62 = vmax.f32 %v2107_v58, 0.0  ;;  %v12_v0 = vld [vmem:[%s2457_s0] sm:$0xff]  ;;  %v13_v3 = vld [vmem:[%s2457_s0 + $0x8] sm:$0xff] }
   0xe   :  { %v2090_v50 = vpack.c.bf16 %v60_v43, %v59_v34  ;;  %v66_v51 = vpack.c.bf16 %v61_v45, %v60_v43  ;;  %v642_v54 = vpack.c.bf16 %v637_v49, %v636_v48  ;;  %v1919_v60 = vld [vmem:[%s2456_s1 + $0x150] sm:$0xff]   ;;  %v2116_v63 = vpack.c.bf16 %v636_v48, %v635_v35  ;;  %v1922_v17 = vld [vmem:[%s2456_s1 + $0x20] sm:$0xff]   ;;  %v1924_v20 = vld [vmem:[%s2456_s1 + $0x28] sm:$0xff]  }
   0xf   :  { %1609 = vmatpush3.bf16.msra.mxu1 %v1904_v6  ;;  %v2121_v1 = vpack.c.bf16 %v62_v55, %v61_v45  ;;  %v67_v2 = vpack.c.bf16 %v63_v56, %v62_v55  ;;  %v20_v4 = vmax.f32 %v12_v0, 0.0  ;;  %v2128_v5 = vpack.c.bf16 %v638_v61, %v637_v49  ;;  %v1920_v6 = vld [vmem:[%s2456_s1 + $0x18] sm:$0xff]   ;;  %v1923_v19 = vld [vmem:[%s2456_s1 + $0x160] sm:$0xff]   ;;  %v1925_v21 = vld [vmem:[%s2456_s1 + $0x168] sm:$0xff]  }
  0x10   :  { %1705 = vmatpush3.bf16.msra.mxu0 %v1905_v7  ;;  %1610 = vmatprep.subr.bf16.mxu1 %v1906_v8  ;;  %v643_v7 = vpack.c.bf16 %v639_v62, %v638_v61  ;;  %v1927_v23 = vld [vmem:[%s2456_s1 + $0x170] sm:$0xff]   ;;  %v2176_v26 = vld [vmem:[%s2457_s0 + $0x1b] sm:$0xff]  ;;  %v2187_v30 = vld [vmem:[%s2457_s0 + $0x23] sm:$0xff] }
  0x11   :  { %1706 = vmatprep.subr.bf16.mxu0 %v1907_v9  ;;  %v14_v24 = vld [vmem:[%s2457_s0 + $0x10] sm:$0xff]  ;;  %v1928_v27 = vld [vmem:[%s2456_s1 + $0x38] sm:$0xff]   ;;  %v16_v32 = vld [vmem:[%s2457_s0 + $0x20] sm:$0xff]  ;;  %v792_v40 = vmax.f32 %v2187_v30, 0.0 }
  0x12   :  { %v1930_v34 = vld [vmem:[%s2456_s1 + $0x80] sm:$0xff]   ;;  %v22_v35 = vmax.f32 %v14_v24, 0.0  ;;  %v24_v42 = vmax.f32 %v16_v32, 0.0  ;;  %v18_v45 = vld [vmem:[%s2457_s0 + $0x30] sm:$0xff]  ;;  %v1932_v47 = vld [vmem:[%s2456_s1 + $0x88] sm:$0xff]  }
  0x13   :  { %1611 = vmatpush3.bf16.msra.mxu1 %v1906_v8  ;;  %v21_v8 = vmax.f32 %v13_v3, 0.0  ;;  %v19_v49 = vld [vmem:[%s2457_s0 + $0x38] sm:$0xff]  ;;  %v1933_v55 = vld [vmem:[%s2456_s1 + $0x188] sm:$0xff]   ;;  %v1947_v24 = vld [vmem:[%s2456_s1 + $0x1c0] sm:$0xff]  }
  0x14   :  { %1707 = vmatpush3.bf16.msra.mxu0 %v1907_v9  ;;  %1612 = vmatprep.subr.bf16.mxu1 %v1908_v10  ;;  %v781_v9 = vld [vmem:[%s2457_s0 + $0xb] sm:$0xff]  ;;  %v2231_v52 = vld [vmem:[%s2457_s0 + $0x3b] sm:$0xff]  ;;  %v27_v61 = vmax.f32 %v19_v49, 0.0 }
  0x15   :  { %1708 = vmatprep.subr.bf16.mxu0 %v1909_v13  ;;  %v789_v11 = vmax.f32 %v781_v9, 0.0  ;;  %v28_v14 = vpack.c.bf16 %v21_v8, %v20_v4  ;;  %v310_v0 = vld [vmem:[%s2457_s0 + $0x2] sm:$0xff]  ;;  %v1934_v4 = vld [vmem:[%s2456_s1 + $0x90] sm:$0xff]  }
  0x16   :  { %v1940_v16 = vld [vmem:[%s2456_s1 + $0xa8] sm:$0xff]   ;;  %v1954_v58 = vld [vmem:[%s2456_s1 + $0xe0] sm:$0xff]  }
  0x17   :  { %1613 = vmatpush3.bf16.msra.mxu1 %v1908_v10  ;;  %v2141_v10 = vld [vmem:[%s2457_s0 + $0x13] sm:$0xff]  ;;  %v1966_v53 = vld [vmem:[%s2456_s1 + $0x220] sm:$0xff]  }
  0x18   :  { %1709 = vmatpush3.bf16.msra.mxu0 %v1909_v13  ;;  %1614 = vmatprep.subr.bf16.mxu1 %v1910_v22  ;;  %v790_v12 = vmax.f32 %v2141_v10, 0.0  ;;  %v1921_v13 = vld [vmem:[%s2456_s1 + $0x158] sm:$0xff]   ;;  %v1957_v10 = vld [vmem:[%s2456_s1 + $0x1e8] sm:$0xff]  }
  0x19   :  { %1710 = vmatprep.subr.bf16.mxu0 %v1911_v25 }
  0x1a   :  { %v797_v15 = vpack.c.bf16 %v790_v12, %v789_v11  ;;  %v1936_v11 = vld [vmem:[%s2456_s1 + $0x98] sm:$0xff]  }
  0x1b   :  { %1615 = vmatpush3.bf16.msra.mxu1 %v1910_v22  ;;  %v1926_v22 = vld [vmem:[%s2456_s1 + $0x30] sm:$0xff]  }
  0x1c   :  { %1711 = vmatpush3.bf16.msra.mxu0 %v1911_v25  ;;  %1616 = vmatprep.subr.bf16.mxu1 %v1912_v28  ;;  %v15_v25 = vld [vmem:[%s2457_s0 + $0x18] sm:$0xff] }
  0x1d   :  { %1712 = vmatprep.subr.bf16.mxu0 %v1913_v33 }
  0x1f   :  { %1617 = vmatpush3.bf16.msra.mxu1 %v1912_v28  ;;  %v1929_v28 = vld [vmem:[%s2456_s1 + $0x178] sm:$0xff]  }
  0x20   :  { %1713 = vmatpush3.bf16.msra.mxu0 %v1913_v33  ;;  %1626 = vmatprep.subr.bf16.mxu1 %v1914_v36  ;;  %v17_v33 = vld [vmem:[%s2457_s0 + $0x28] sm:$0xff] }
  0x21   :  { %1722 = vmatprep.subr.bf16.mxu0 %v1915_v37  ;;  %v25_v43 = vmax.f32 %v17_v33, 0.0  ;;  %v1950_v33 = vld [vmem:[%s2456_s1 + $0xd0] sm:$0xff]  }
  0x22   :  { %1619 = vmatmul.mubr.bf16.vlgmr.msra.gmra.mrb[0].mxu1 %v65_v38  ;;  %v2202_v38 = vld [vmem:[%s2457_s0 + $0x2b] sm:$0xff] }
  0x23   :  { %1627 = vmatpush3.bf16.msra.mxu1 %v1914_v36  ;;  %1715 = vmatmul.mubr.bf16.vlgmr.msra.gmra.mrb[0].mxu0 %v641_v41  ;;  %v23_v36 = vmax.f32 %v15_v25, 0.0  ;;  %v2211_v41 = vld [vmem:[%s2457_s0 + $0x33] sm:$0xff]  ;;  %v30_v57 = vpack.c.bf16 %v25_v43, %v24_v42  ;;  %v1948_v25 = vld [vmem:[%s2456_s1 + $0xc8] sm:$0xff]  }
  0x24   :  { %1723 = vmatpush3.bf16.msra.mxu0 %v1915_v37  ;;  %1628 = vmatprep.subr.bf16.mxu1 %v1916_v39  ;;  %v791_v37 = vmax.f32 %v2176_v26, 0.0  ;;  %v794_v48 = vmax.f32 %v2211_v41, 0.0  ;;  %v1960_v26 = vld [vmem:[%s2456_s1 + $0xf8] sm:$0xff]   ;;  %v474_v43 = vld [vmem:[%s2457_s0 + $0x41] sm:$0xff] }
  0x25   :  { %1724 = vmatprep.subr.bf16.mxu0 %v1917_v44  ;;  %1622 = vmatprep.mubr.bf16.mxu1 %v66_v51  ;;  %v29_v46 = vpack.c.bf16 %v23_v36, %v22_v35  ;;  %v1952_v35 = vld [vmem:[%s2456_s1 + $0xd8] sm:$0xff]  }
  0x26   :  { %1718 = vmatprep.mubr.bf16.mxu0 %v642_v54  ;;  %v798_v51 = vpack.c.bf16 %v792_v40, %v791_v37  ;;  %v2236_v54 = vld [vmem:[%s2457_s0 + $0x43] sm:$0xff]  ;;  %v1953_v36 = vld [vmem:[%s2456_s1 + $0x1d8] sm:$0xff]  }
  0x27   :  { %1629 = vmatpush3.bf16.msra.mxu1 %v1916_v39  ;;  %v1931_v39 = vld [vmem:[%s2456_s1 + $0x180] sm:$0xff]   ;;  %v796_v3 = vmax.f32 %v2236_v54, 0.0  ;;  %v1968_v54 = vld [vmem:[%s2456_s1 + $0x230] sm:$0xff]  }
  0x28   :  { %1725 = vmatpush3.bf16.msra.mxu0 %v1917_v44  ;;  %1630 = vmatprep.subr.bf16.mxu1 %v1918_v59  ;;  %v793_v44 = vmax.f32 %v2202_v38, 0.0  ;;  %v482_v38 = vmax.f32 %v474_v43, 0.0  ;;  %v1257_v41 = vld [vmem:[%s2457_s0 + $0x3c] sm:$0xff] }
  0x29   :  { %1726 = vmatprep.subr.bf16.mxu0 %v1919_v60 }
  0x2a   :  { %1623 = vmatmul.mubr.bf16.gmra.mrb[4].mxu1 %v67_v2  ;;  %v795_v2 = vmax.f32 %v2231_v52, 0.0  ;;  %v1112_v42 = vpack.c.bf16 %v793_v44, %v792_v40  ;;  %v1252_v40 = vld [vmem:[%s2457_s0 + $0x14] sm:$0xff]  ;;  %v486_v52 = vpack.c.bf16 %v482_v38, %v63_v56  ;;  %v1967_v56 = vld [vmem:[%s2456_s1 + $0x228] sm:$0xff]  }
  0x2b   :  { %1631 = vmatpush3.bf16.msra.mxu1 %v1918_v59  ;;  %1719 = vmatmul.mubr.bf16.gmra.mrb[4].mxu0 %v643_v7  ;;  %v26_v59 = vmax.f32 %v18_v45, 0.0  ;;  %v318_v7 = vmax.f32 %v310_v0, 0.0  ;;  %v1963_v45 = vld [vmem:[%s2456_s1 + $0x208] sm:$0xff]   ;;  %v1260_v49 = vmax.f32 %v1252_v40, 0.0 }
  0x2c   :  { %1727 = vmatpush3.bf16.msra.mxu0 %v1919_v60  ;;  %1632 = vmatprep.subr.bf16.mxu1 %v1920_v6  ;;  %v799_v60 = vpack.c.bf16 %v794_v48, %v793_v44  ;;  %v800_v9 = vpack.c.bf16 %v796_v3, %v795_v2  ;;  %v1113_v30 = vpack.c.bf16 %v795_v2, %v794_v48  ;;  %v1253_v44 = vld [vmem:[%s2457_s0 + $0x1c] sm:$0xff]  ;;  %v1964_v48 = vld [vmem:[%s2456_s1 + $0x210] sm:$0xff]   ;;  %v1258_v0 = vld [vmem:[%s2457_s0 + $0x44] sm:$0xff] }
  0x2d   :  { %1728 = vmatprep.subr.bf16.mxu0 %v1921_v13  ;;  %1642 = vmatprep.mubr.bf16.mxu1 %v28_v14  ;;  %v31_v8 = vpack.c.bf16 %v27_v61, %v26_v59  ;;  %v326_v14 = vpack.c.bf16 %v632_v18, %v318_v7  ;;  %v1941_v18 = vld [vmem:[%s2456_s1 + $0x1a8] sm:$0xff]   ;;  %v1266_v7 = vmax.f32 %v1258_v0, 0.0 }
  0x2e   :  { %1738 = vmatprep.mubr.bf16.mxu0 %v797_v15  ;;  %v1938_v15 = vld [vmem:[%s2456_s1 + $0xa0] sm:$0xff]   ;;  %v1259_v2 = vld [vmem:[%s2457_s0 + $0x4c] sm:$0xff] }
  0x2f   :  { %1633 = vmatpush3.bf16.msra.mxu1 %v1920_v6  ;;  %v1935_v6 = vld [vmem:[%s2456_s1 + $0x190] sm:$0xff]  }
  0x30   :  { %1729 = vmatpush3.bf16.msra.mxu0 %v1921_v13  ;;  %1634 = vmatprep.subr.bf16.mxu1 %v1922_v17  ;;  %v1937_v13 = vld [vmem:[%s2456_s1 + $0x198] sm:$0xff]  }
  0x31   :  { %1730 = vmatprep.subr.bf16.mxu0 %v1923_v19 }
  0x33   :  { %1635 = vmatpush3.bf16.msra.mxu1 %v1922_v17  ;;  %v1939_v17 = vld [vmem:[%s2456_s1 + $0x1a0] sm:$0xff]  }
  0x34   :  { %1731 = vmatpush3.bf16.msra.mxu0 %v1923_v19  ;;  %1636 = vmatprep.subr.bf16.mxu1 %v1924_v20  ;;  %v1942_v19 = vld [vmem:[%s2456_s1 + $0xb0] sm:$0xff]  }
  0x35   :  { %1732 = vmatprep.subr.bf16.mxu0 %v1925_v21 }
  0x37   :  { %1637 = vmatpush3.bf16.msra.mxu1 %v1924_v20  ;;  %v1943_v20 = vld [vmem:[%s2456_s1 + $0x1b0] sm:$0xff]  }
  0x38   :  { %1733 = vmatpush3.bf16.msra.mxu0 %v1925_v21  ;;  %1638 = vmatprep.subr.bf16.mxu1 %v1926_v22  ;;  %v1944_v21 = vld [vmem:[%s2456_s1 + $0xb8] sm:$0xff]  }
  0x39   :  { %1734 = vmatprep.subr.bf16.mxu0 %v1927_v23 }
  0x3b   :  { %1639 = vmatpush3.bf16.msra.mxu1 %v1926_v22  ;;  %v1945_v22 = vld [vmem:[%s2456_s1 + $0x1b8] sm:$0xff]  }
  0x3c   :  { %1735 = vmatpush3.bf16.msra.mxu0 %v1927_v23  ;;  %1640 = vmatprep.subr.bf16.mxu1 %v1928_v27  ;;  %v1946_v23 = vld [vmem:[%s2456_s1 + $0xc0] sm:$0xff]  }
  0x3d   :  { %1736 = vmatprep.subr.bf16.mxu0 %v1929_v28 }
  0x3f   :  { %1641 = vmatpush3.bf16.msra.mxu1 %v1928_v27  ;;  %v945_v27 = vld [vmem:[%s2457_s0 + $0x4a] sm:$0xff] }
  0x40   :  { %1737 = vmatpush3.bf16.msra.mxu0 %v1929_v28  ;;  %1650 = vmatprep.subr.bf16.mxu1 %v1930_v34  ;;  %v1949_v28 = vld [vmem:[%s2456_s1 + $0x1c8] sm:$0xff]   ;;  %v953_v32 = vmax.f32 %v945_v27, 0.0 }
  0x41   :  { %1746 = vmatprep.subr.bf16.mxu0 %v1931_v39 }
  0x42   :  { %1643 = vmatmul.mubr.bf16.vlgmr.msra.gmra.mrb[0].mxu1 %v29_v46  ;;  %v1102_v46 = vld [vmem:[%s2457_s0 + $0x4b] sm:$0xff] }
  0x43   :  { %1651 = vmatpush3.bf16.msra.mxu1 %v1930_v34  ;;  %1739 = vmatmul.mubr.bf16.vlgmr.msra.gmra.mrb[0].mxu0 %v798_v51  ;;  %v1951_v34 = vld [vmem:[%s2456_s1 + $0x1d0] sm:$0xff]   ;;  %v1261_v51 = vmax.f32 %v1253_v44, 0.0 }
  0x44   :  { %1747 = vmatpush3.bf16.msra.mxu0 %v1931_v39  ;;  %1652 = vmatprep.subr.bf16.mxu1 %v1932_v47  ;;  %v1962_v39 = vld [vmem:[%s2456_s1 + $0x200] sm:$0xff]  }
  0x45   :  { %1748 = vmatprep.subr.bf16.mxu0 %v1933_v55  ;;  %1646 = vmatprep.mubr.bf16.mxu1 %v30_v57  ;;  %v1265_v57 = vmax.f32 %v1257_v41, 0.0 }
  0x46   :  { %1742 = vmatprep.mubr.bf16.mxu0 %v799_v60  ;;  %v1965_v60 = vld [vmem:[%s2456_s1 + $0x218] sm:$0xff]  }
  0x47   :  { %1653 = vmatpush3.bf16.msra.mxu1 %v1932_v47  ;;  %v1110_v47 = vmax.f32 %v1102_v46, 0.0 }
  0x48   :  { %1749 = vmatpush3.bf16.msra.mxu0 %v1933_v55  ;;  %1654 = vmatprep.subr.bf16.mxu1 %v1934_v4 }
  0x49   :  { %1750 = vmatprep.subr.bf16.mxu0 %v1935_v6  ;;  %v1114_v59 = vpack.c.bf16 %v1110_v47, %v796_v3  ;;  %v1969_v3 = vld [vmem:[%s2456_s1 + $0x238] sm:$0xff]  }
  0x4a   :  { %1647 = vmatmul.mubr.bf16.gmra.mrb[4].mxu1 %v31_v8  ;;  %v1267_v8 = vmax.f32 %v1259_v2, 0.0 }
  0x4b   :  { %1655 = vmatpush3.bf16.msra.mxu1 %v1934_v4  ;;  %1743 = vmatmul.mubr.bf16.gmra.mrb[4].mxu0 %v800_v9  ;;  %v1254_v4 = vld [vmem:[%s2457_s0 + $0x24] sm:$0xff] }
  0x4c   :  { %1751 = vmatpush3.bf16.msra.mxu0 %v1935_v6  ;;  %1656 = vmatprep.subr.bf16.mxu1 %v1936_v11  ;;  %v1255_v6 = vld [vmem:[%s2457_s0 + $0x2c] sm:$0xff]  ;;  %v1262_v9 = vmax.f32 %v1254_v4, 0.0 }
  0x4d   :  { %1752 = vmatprep.subr.bf16.mxu0 %v1937_v13  ;;  %1666 = vmatprep.mubr.bf16.mxu1 %v326_v14 }
  0x4e   :  { %1762 = vmatprep.mubr.bf16.mxu0 %v2058_v31 }
  0x4f   :  { %1657 = vmatpush3.bf16.msra.mxu1 %v1936_v11  ;;  %v1263_v11 = vmax.f32 %v1255_v6, 0.0 }
  0x50   :  { %1753 = vmatpush3.bf16.msra.mxu0 %v1937_v13  ;;  %1658 = vmatprep.subr.bf16.mxu1 %v1938_v15  ;;  %v1271_v13 = vpack.c.bf16 %v1267_v8, %v1266_v7 }
  0x51   :  { %1754 = vmatprep.subr.bf16.mxu0 %v1939_v17  ;;  %v1269_v14 = vpack.c.bf16 %v1263_v11, %v1262_v9 }
  0x53   :  { %1659 = vmatpush3.bf16.msra.mxu1 %v1938_v15 }
  0x54   :  { %1755 = vmatpush3.bf16.msra.mxu0 %v1939_v17  ;;  %1660 = vmatprep.subr.bf16.mxu1 %v1940_v16 }
  0x55   :  { %1756 = vmatprep.subr.bf16.mxu0 %v1941_v18 }
  0x57   :  { %1661 = vmatpush3.bf16.msra.mxu1 %v1940_v16 }
  0x58   :  { %1757 = vmatpush3.bf16.msra.mxu0 %v1941_v18  ;;  %1662 = vmatprep.subr.bf16.mxu1 %v1942_v19 }
  0x59   :  { %1758 = vmatprep.subr.bf16.mxu0 %v1943_v20 }
  0x5b   :  { %1663 = vmatpush3.bf16.msra.mxu1 %v1942_v19 }
  0x5c   :  { %1759 = vmatpush3.bf16.msra.mxu0 %v1943_v20  ;;  %1664 = vmatprep.subr.bf16.mxu1 %v1944_v21 }
  0x5d   :  { %1760 = vmatprep.subr.bf16.mxu0 %v1945_v22 }
  0x5f   :  { %1665 = vmatpush3.bf16.msra.mxu1 %v1944_v21 }
  0x60   :  { %1761 = vmatpush3.bf16.msra.mxu0 %v1945_v22  ;;  %1674 = vmatprep.subr.bf16.mxu1 %v1946_v23 }
  0x61   :  { %1770 = vmatprep.subr.bf16.mxu0 %v1947_v24 }
  0x62   :  { %1667 = vmatmul.mubr.bf16.vlgmr.msra.gmra.mrb[0].mxu1 %v2058_v31  ;;  %v957_v31 = vpack.c.bf16 %v953_v32, %v639_v62  ;;  %v1955_v62 = vld [vmem:[%s2456_s1 + $0x1e0] sm:$0xff]  }
  0x63   :  { %1675 = vmatpush3.bf16.msra.mxu1 %v1946_v23  ;;  %1763 = vmatmul.mubr.bf16.vlgmr.msra.gmra.mrb[0].mxu0 %v2116_v63 }
  0x64   :  { %1771 = vmatpush3.bf16.msra.mxu0 %v1947_v24  ;;  %1676 = vmatprep.subr.bf16.mxu1 %v1948_v25 }
  0x65   :  { %1772 = vmatprep.subr.bf16.mxu0 %v1949_v28  ;;  %1670 = vmatprep.mubr.bf16.mxu1 %v2116_v63  ;;  %v1111_v63 = vpack.c.bf16 %v791_v37, %v790_v12  ;;  %v1959_v12 = vld [vmem:[%s2456_s1 + $0x1f0] sm:$0xff]   ;;  %v1961_v37 = vld [vmem:[%s2456_s1 + $0x1f8] sm:$0xff]  }
  0x66   :  { %1766 = vmatprep.mubr.bf16.mxu0 %v2128_v5 }
  0x67   :  { %1677 = vmatpush3.bf16.msra.mxu1 %v1948_v25 }
  0x68   :  { %1773 = vmatpush3.bf16.msra.mxu0 %v1949_v28  ;;  %1678 = vmatprep.subr.bf16.mxu1 %v1950_v33 }
  0x69   :  { %1774 = vmatprep.subr.bf16.mxu0 %v1951_v34 }
  0x6a   :  { %1671 = vmatmul.mubr.bf16.gmra.mrb[4].mxu1 %v2128_v5  ;;  %v1956_v5 = vld [vmem:[%s2456_s1 + $0xe8] sm:$0xff]  }
  0x6b   :  { %1679 = vmatpush3.bf16.msra.mxu1 %v1950_v33  ;;  %1767 = vmatmul.mubr.bf16.gmra.mrb[4].mxu0 %v957_v31 }
  0x6c   :  { %1775 = vmatpush3.bf16.msra.mxu0 %v1951_v34  ;;  %1680 = vmatprep.subr.bf16.mxu1 %v1952_v35 }
  0x6d   :  { %1776 = vmatprep.subr.bf16.mxu0 %v1953_v36  ;;  %1690 = vmatprep.mubr.bf16.mxu1 %v2053_v29  ;;  %v1958_v29 = vld [vmem:[%s2456_s1 + $0xf0] sm:$0xff]  }
  0x6e   :  { %1786 = vmatprep.mubr.bf16.mxu0 %v1111_v63 }
  0x6f   :  { %1681 = vmatpush3.bf16.msra.mxu1 %v1952_v35 }
  0x70   :  { %1777 = vmatpush3.bf16.msra.mxu0 %v1953_v36  ;;  %1682 = vmatprep.subr.bf16.mxu1 %v1954_v58 }
  0x71   :  { %1778 = vmatprep.subr.bf16.mxu0 %v1955_v62 }
  0x73   :  { %1683 = vmatpush3.bf16.msra.mxu1 %v1954_v58 }
  0x74   :  { %1779 = vmatpush3.bf16.msra.mxu0 %v1955_v62  ;;  %1684 = vmatprep.subr.bf16.mxu1 %v1956_v5 }
  0x75   :  { %1780 = vmatprep.subr.bf16.mxu0 %v1957_v10 }
  0x77   :  { %1685 = vmatpush3.bf16.msra.mxu1 %v1956_v5 }
  0x78   :  { %1781 = vmatpush3.bf16.msra.mxu0 %v1957_v10  ;;  %1686 = vmatprep.subr.bf16.mxu1 %v1958_v29 }
  0x79   :  { %1782 = vmatprep.subr.bf16.mxu0 %v1959_v12 }
  0x7b   :  { %1687 = vmatpush3.bf16.msra.mxu1 %v1958_v29 }
  0x7c   :  { %1783 = vmatpush3.bf16.msra.mxu0 %v1959_v12  ;;  %1688 = vmatprep.subr.bf16.mxu1 %v1960_v26 }
  0x7d   :  { %1784 = vmatprep.subr.bf16.mxu0 %v1961_v37 }
  0x7f   :  { %1689 = vmatpush3.bf16.msra.mxu1 %v1960_v26 }
  0x80   :  { %1785 = vmatpush3.bf16.msra.mxu0 %v1961_v37  ;;  %1818 = vmatprep.subr.bf16.mxu1 %v1962_v39 }
  0x81   :  { %1794 = vmatprep.subr.bf16.mxu0 %v1962_v39 }
  0x82   :  { %1691 = vmatmul.mubr.bf16.vlgmr.msra.gmra.mrb[0].mxu1 %v2090_v50  ;;  %v1256_v50 = vld [vmem:[%s2457_s0 + $0x34] sm:$0xff] }
  0x83   :  { %1787 = vmatmul.mubr.bf16.vlgmr.msra.gmra.mrb[0].mxu0 %v1112_v42  ;;  %1826 = vmatpush3.bf16.msra.mxu1 %v1962_v39  ;;  %v1264_v55 = vmax.f32 %v1256_v50, 0.0 }
  0x84   :  { %1795 = vmatpush3.bf16.msra.mxu0 %v1962_v39  ;;  %1819 = vmatprep.subr.bf16.mxu1 %v1963_v45 }
  0x85   :  { %1796 = vmatprep.subr.bf16.mxu0 %v1963_v45  ;;  %1694 = vmatprep.mubr.bf16.mxu1 %v2121_v1  ;;  %v1268_v1 = vpack.c.bf16 %v1261_v51, %v1260_v49  ;;  %v1270_v61 = vpack.c.bf16 %v1265_v57, %v1264_v55 }
  0x86   :  { %1790 = vmatprep.mubr.bf16.mxu0 %v1113_v30 }
  0x87   :  { %1827 = vmatpush3.bf16.msra.mxu1 %v1963_v45 }
  0x88   :  { %1797 = vmatpush3.bf16.msra.mxu0 %v1963_v45  ;;  %1820 = vmatprep.subr.bf16.mxu1 %v1964_v48 }
  0x89   :  { %1798 = vmatprep.subr.bf16.mxu0 %v1964_v48 }
  0x8a   :  { %1695 = vmatmul.mubr.bf16.gmra.mrb[4].mxu1 %v486_v52 }
  0x8b   :  { %1791 = vmatmul.mubr.bf16.gmra.mrb[4].mxu0 %v1114_v59  ;;  %1828 = vmatpush3.bf16.msra.mxu1 %v1964_v48 }
  0x8c   :  { %1799 = vmatpush3.bf16.msra.mxu0 %v1964_v48  ;;  %1821 = vmatprep.subr.bf16.mxu1 %v1965_v60 }
  0x8d   :  { %1800 = vmatprep.subr.bf16.mxu0 %v1965_v60  ;;  %1810 = vmatprep.mubr.bf16.mxu0 %v1268_v1 }
  0x8e   :  { %1814 = vmatprep.mubr.bf16.mxu1 %v1270_v61 }
  0x8f   :  { %1829 = vmatpush3.bf16.msra.mxu1 %v1965_v60 }
  0x90   :  { %1801 = vmatpush3.bf16.msra.mxu0 %v1965_v60  ;;  %1822 = vmatprep.subr.bf16.mxu1 %v1966_v53 }
  0x91   :  { %1802 = vmatprep.subr.bf16.mxu0 %v1966_v53 }
  0x93   :  { %1830 = vmatpush3.bf16.msra.mxu1 %v1966_v53 }
  0x94   :  { %1803 = vmatpush3.bf16.msra.mxu0 %v1966_v53  ;;  %1823 = vmatprep.subr.bf16.mxu1 %v1967_v56 }
  0x95   :  { %1804 = vmatprep.subr.bf16.mxu0 %v1967_v56 }
  0x97   :  { %1831 = vmatpush3.bf16.msra.mxu1 %v1967_v56 }
  0x98   :  { %1805 = vmatpush3.bf16.msra.mxu0 %v1967_v56  ;;  %1824 = vmatprep.subr.bf16.mxu1 %v1968_v54 }
  0x99   :  { %1806 = vmatprep.subr.bf16.mxu0 %v1968_v54 }
  0x9b   :  { %1832 = vmatpush3.bf16.msra.mxu1 %v1968_v54 }
  0x9c   :  { %1807 = vmatpush3.bf16.msra.mxu0 %v1968_v54  ;;  %1825 = vmatprep.subr.bf16.mxu1 %v1969_v3 }
  0x9d   :  { %1808 = vmatprep.subr.bf16.mxu0 %v1969_v3 }
  0x9f   :  { %1833 = vmatpush3.bf16.msra.mxu1 %v1969_v3 }
  0xa0   :  { %1809 = vmatpush3.bf16.msra.mxu0 %v1969_v3 }
  0xa2   :  { %1815 = vmatmul.mubr.bf16.vlgmr.msra.gmra.mrb[8].mxu1 %v1271_v13 }
  0xa3   :  { %1811 = vmatmul.mubr.bf16.vlgmr.msra.gmra.mrb[0].mxu0 %v1269_v14 }
 0x155   :  { %v1692_v15 = vpop.f32.mrb[0].mxu1 }
 0x156   :  { %v585_v17 = vpop.f32.mrb[1].mxu1 }
 0x157   :  { %v1693_v16 = vpop.f32.mrb[2].mxu1 }
 0x158   :  { %v588_v18 = vpop.f32.mrb[3].mxu1 }
 0x15d   :  { %v1696_v19 = vpop.f32.mrb[4].mxu1 }
 0x15e   :  { %v1792_v20 = vpop.f32.mrb[4].mxu0  ;;  %v601_v21 = vpop.f32.mrb[5].mxu1 }
 0x15f   :  { %v1838_v22 = vadd.f32 %v1792_v20, %v1696_v19  ;;  %v1229_v23 = vpop.f32.mrb[5].mxu0  ;;  %v1697_v24 = vpop.f32.mrb[6].mxu1 }
 0x160   :  { %v1840_v25 = vadd.f32 %v1229_v23, %v601_v21  ;;  %v1793_v27 = vpop.f32.mrb[6].mxu0  ;;  %v604_v28 = vpop.f32.mrb[7].mxu1 }
 0x161   :  { %v1842_v32 = vadd.f32 %v1793_v27, %v1697_v24  ;;  %v1232_v33 = vpop.f32.mrb[7].mxu0 }
 0x162   :  { %v1844_v34 = vadd.f32 %v1232_v33, %v604_v28 }
 0x175   :  { %v1816_v31 = vpop.f32.mrb[8].mxu1 }
 0x176   :  { %v1812_v35 = vpop.f32.mrb[0].mxu0  ;;  %v1839_v36 = vadd.f32 %v1838_v22, %v1816_v31  ;;  %v1386_v63 = vpop.f32.mrb[9].mxu1 }
 0x177   :  { %v1834_v58 = vadd.f32 %v1812_v35, %v1692_v15  ;;  %v1370_v62 = vpop.f32.mrb[1].mxu0  ;;  %v1841_v5 = vadd.f32 %v1840_v25, %v1386_v63  ;;  %v1817_v10 = vpop.f32.mrb[10].mxu1 }
 0x178   :  { %1416 = vst.msk [vmem:[%s2458_s2 + $0x30] sm:$0xff] %vm1409_vm0, %v1839_v36  ;;  %v1835_v29 = vadd.f32 %v1370_v62, %v585_v17  ;;  %v1813_v12 = vpop.f32.mrb[2].mxu0  ;;  %v1843_v26 = vadd.f32 %v1842_v32, %v1817_v10  ;;  %v1389_v37 = vpop.f32.mrb[11].mxu1 }
 0x179   :  { %1412 = vst.msk [vmem:[%s2458_s2 + $0x10] sm:$0xff] %vm1409_vm0, %v1834_v58  ;;  %1414 = vst.msk [vmem:[%s2458_s2 + $0x20] sm:$0xff] %vm1409_vm0, %v1841_v5  ;;  %v1836_v39 = vadd.f32 %v1813_v12, %v1693_v16  ;;  %v1373_v42 = vpop.f32.mrb[3].mxu0  ;;  %v1845_v43 = vadd.f32 %v1844_v34, %v1389_v37 }
 0x17a   :  { %1410 = vst.msk [vmem:[%s2458_s2] sm:$0xff] %vm1409_vm0, %v1835_v29  ;;  %1417 = vst.msk [vmem:[%s2458_s2 + $0x38] sm:$0xff] %vm1409_vm0, %v1843_v26  ;;  %v1837_v45 = vadd.f32 %v1373_v42, %v588_v18 }
 0x17b   :  { %1413 = vst.msk [vmem:[%s2458_s2 + $0x18] sm:$0xff] %vm1409_vm0, %v1836_v39  ;;  %1415 = vst.msk [vmem:[%s2458_s2 + $0x28] sm:$0xff] %vm1409_vm0, %v1845_v43 }
 0x17c   :  { %1411 = vst.msk [vmem:[%s2458_s2 + $0x8] sm:$0xff] %vm1409_vm0, %v1837_v45 }

</bundles_post_ra>
